<compile_context>
chip_gen: v7x
topology: tpu7x:2x2x1
jax: 0.10.0
libtpu: 0.0.40
codegen_flags: <defaults>
</compile_context>

<pallas_src>
import jax
import jax.numpy as jnp
from jax.experimental import pallas as pl
from jax.experimental.pallas import tpu as pltpu

IN_FEATURES = 28 * 28   # 784
NUM_CLASSES = 10
TILE_B = 4096           # rows per grid step (multiple of 8)


def _round_up(n, m):
    return ((n + m - 1) // m) * m


def _logreg_kernel(x_ref, w_ref, b_ref, o_ref):
    # x_ref: (TILE_B, 784) native dtype (f32), w_ref: (784, 10) bf16,
    # b_ref: (1, 10) f32,                      o_ref: (TILE_B, 10) f32
    # Cast activations to bf16 on the VPU (hidden under the input DMA); the
    # MXU matmul accumulates in f32 via preferred_element_type.
    x = x_ref[...].astype(jnp.bfloat16)
    logits = jnp.dot(x, w_ref[...], preferred_element_type=jnp.float32) + b_ref[...]

    # Sigmoid in f32 (EUP logistic).
    s = jax.nn.sigmoid(logits)

    # Softmax over dim=1.  s is bounded in (0,1) so exp() cannot overflow and
    # the usual max-subtraction pass is unnecessary.  Exact divide so each row
    # sums to 1 to f32 precision (approx reciprocal was not accurate enough).
    e = jnp.exp(s)
    denom = jnp.sum(e, axis=1, keepdims=True)
    o_ref[...] = e / denom


def prepare_params(weight, bias):
    """One-time parameter transform (do NOT re-run per forward call).
       weight: (10, 784) torch convention -> (784, 10) bf16; bias -> (1, 10) f32."""
    w_t = jnp.transpose(weight).astype(jnp.bfloat16)
    b2d = jnp.reshape(bias, (1, NUM_CLASSES)).astype(jnp.float32)
    return w_t, b2d


def logistic_regression_forward(x, w_t_bf16, bias2d, *, tile_b=TILE_B):
    """x: anything reshapeable to (-1, 784) (e.g. NCHW (B, 1, 28, 28)).
       w_t_bf16/bias2d: outputs of prepare_params().  Returns (B, 10) f32."""
    x2d = jnp.reshape(x, (-1, IN_FEATURES))
    batch = x2d.shape[0]

    # Clamp the tile so (a) tiny batches don't pay for a 4096-row tile of
    # padding and (b) large batches always produce >=2 grid steps so both
    # v7x TensorCores get work on the "parallel" batch axis.
    half = _round_up(-(-batch // 2), 8)
    tb = max(8, min(tile_b, half))
    grid = (pl.cdiv(batch, tb),)

    cost = pl.CostEstimate(
        flops=2 * batch * IN_FEATURES * NUM_CLASSES,
        transcendentals=3 * batch * NUM_CLASSES,          # sigmoid + exp + recip
        bytes_accessed=(batch * IN_FEATURES * x2d.dtype.itemsize   # activations
                        + IN_FEATURES * NUM_CLASSES * 2            # bf16 weight
                        + NUM_CLASSES * 4                          # bias
                        + batch * NUM_CLASSES * 4),                # output
    )

    return pl.pallas_call(
        _logreg_kernel,
        out_shape=jax.ShapeDtypeStruct((batch, NUM_CLASSES), jnp.float32),
        grid=grid,
        in_specs=[
            pl.BlockSpec((tb, IN_FEATURES), lambda i: (i, 0)),            # x tile
            pl.BlockSpec((IN_FEATURES, NUM_CLASSES), lambda i: (0, 0)),   # weight (constant block)
            pl.BlockSpec((1, NUM_CLASSES), lambda i: (0, 0)),             # bias (constant block)
        ],
        out_specs=pl.BlockSpec((tb, NUM_CLASSES), lambda i: (i, 0)),
        compiler_params=pltpu.CompilerParams(
            dimension_semantics=("parallel",),            # batch tiles independent
            vmem_limit_bytes=48 * 1024 * 1024),           # room for 4096-row f32 tiles
        cost_estimate=cost,
    )(x2d, w_t_bf16, bias2d)


if __name__ == "__main__":
    key = jax.random.PRNGKey(0)
    k_x, k_w, k_b = jax.random.split(key, 3)

    # Deterministic synthetic parameters (torch nn.Linear(784, 10) shapes).
    bound = 1.0 / (IN_FEATURES ** 0.5)
    weight = jax.random.uniform(
        k_w, (NUM_CLASSES, IN_FEATURES), jnp.float32, -bound, bound)
    bias = jax.random.uniform(
        k_b, (NUM_CLASSES,), jnp.float32, -bound, bound)

    # Small MNIST-like input, NCHW: (batch=2, channels=1, 28, 28).
    x = jax.random.normal(k_x, (2, 1, 28, 28), jnp.float32)

    w_t, b2d = prepare_params(weight, bias)          # one-time init transform
    out = logistic_regression_forward(x, w_t, b2d)
    out = jax.block_until_ready(out)

    # Plain-JAX reference with matching bf16 rounding of x/W before the matmul
    # (kernel matmul is bf16 inputs with f32 accumulation); residual diff comes
    # only from MXU accumulation order.
    x2d = x.reshape(-1, IN_FEATURES)
    x_bf = x2d.astype(jnp.bfloat16).astype(jnp.float32)
    w_bf = weight.astype(jnp.bfloat16).astype(jnp.float32)
    logits_ref = x_bf @ w_bf.T + bias
    ref = jax.nn.softmax(jax.nn.sigmoid(logits_ref), axis=1)

    assert out.shape == (2, NUM_CLASSES)
    assert out.dtype == jnp.float32
    assert jnp.allclose(out, ref, atol=2e-3, rtol=2e-3)
    assert jnp.allclose(jnp.sum(out, axis=1), 1.0, atol=1e-3)

    print("KERNEL_OK")
</pallas_src>

<mosaic_0001>
module attributes {stable_mosaic.version = 11 : i64} {
  func.func @_logreg_kernel(%arg0: i32, %arg1: memref<8x784xf32, #tpu.memory_space<vmem>>, %arg2: memref<784x10xbf16, #tpu.memory_space<vmem>>, %arg3: memref<1x10xf32, #tpu.memory_space<vmem>>, %arg4: memref<8x10xf32, #tpu.memory_space<vmem>>) attributes {dimension_semantics = [#tpu.dimension_semantics<parallel>], iteration_bounds = array<i64: 1>, scalar_prefetch = 0 : i64, scratch_operands = 0 : i64, tpu.core_type = #tpu.core_type<tc>, window_params = [{transform_indices = @transform_0, window_bounds = array<i64: 8, 784>}, {pipeline_mode = #tpu.pipeline_mode<synchronous>, transform_indices = @transform_1, window_bounds = array<i64: 784, 10>}, {pipeline_mode = #tpu.pipeline_mode<synchronous>, transform_indices = @transform_2, window_bounds = array<i64: 1, 10>}, {transform_indices = @transform_3, window_bounds = array<i64: 8, 10>}]} {
    %c0 = arith.constant 0 : index
    %c0_0 = arith.constant 0 : index
    %0 = vector.load %arg1[%c0, %c0_0] : memref<8x784xf32, #tpu.memory_space<vmem>>, vector<8x784xf32>
    %1 = arith.truncf %0 : vector<8x784xf32> to vector<8x784xbf16>
    %c0_1 = arith.constant 0 : index
    %c0_2 = arith.constant 0 : index
    %2 = vector.load %arg2[%c0_1, %c0_2] : memref<784x10xbf16, #tpu.memory_space<vmem>>, vector<784x10xbf16>
    %cst = arith.constant dense<0.000000e+00> : vector<8x10xf32>
    %3 = tpu.matmul %1, %2, %cst {dimension_numbers = #tpu.dot_dimension_numbers<[1], [0], [0], [1], [0, 0, 1, 1], [], []>} : vector<8x784xbf16>, vector<784x10xbf16>, vector<8x10xf32> -> vector<8x10xf32>
    %c0_3 = arith.constant 0 : index
    %c0_4 = arith.constant 0 : index
    %4 = vector.load %arg3[%c0_3, %c0_4] : memref<1x10xf32, #tpu.memory_space<vmem>>, vector<1x10xf32>
    %5 = vector.broadcast %4 : vector<1x10xf32> to vector<8x10xf32>
    %6 = arith.addf %3, %5 : vector<8x10xf32>
    %7 = arith.negf %6 : vector<8x10xf32>
    %8 = math.exp %7 : vector<8x10xf32>
    %cst_5 = arith.constant 1.000000e+00 : f32
    %9 = vector.broadcast %cst_5 : f32 to vector<8x10xf32>
    %10 = arith.addf %9, %8 : vector<8x10xf32>
    %11 = arith.divf %9, %10 : vector<8x10xf32>
    %12 = math.exp %11 : vector<8x10xf32>
    %cst_6 = arith.constant dense<0.000000e+00> : vector<8xf32>
    %13 = vector.multi_reduction <add>, %12, %cst_6 [1] : vector<8x10xf32> to vector<8xf32>
    %14 = vector.shape_cast %13 : vector<8xf32> to vector<8x1xf32>
    %15 = vector.broadcast %14 : vector<8x1xf32> to vector<8x10xf32>
    %16 = arith.divf %12, %15 : vector<8x10xf32>
    %c0_7 = arith.constant 0 : index
    %c0_8 = arith.constant 0 : index
    %17 = vector.load %arg4[%c0_7, %c0_8] : memref<8x10xf32, #tpu.memory_space<vmem>>, vector<8x10xf32>
    tpu.vector_store %arg4[%c0_7, %c0_8], %16 {strides = array<i32>} : memref<8x10xf32, #tpu.memory_space<vmem>>, vector<8x10xf32>,
    return
  }
  func.func @transform_0(%arg0: i32) -> (i32, i32) {
    %c0_i32 = arith.constant 0 : i32
    %c0_i32_0 = arith.constant 0 : i32
    return %arg0, %c0_i32 : i32, i32
  }
  func.func @transform_1(%arg0: i32) -> (i32, i32) {
    %c0_i32 = arith.constant 0 : i32
    %c0_i32_0 = arith.constant 0 : i32
    %c0_i32_1 = arith.constant 0 : i32
    return %c0_i32, %c0_i32_0 : i32, i32
  }
  func.func @transform_2(%arg0: i32) -> (i32, i32) {
    %c0_i32 = arith.constant 0 : i32
    %c0_i32_0 = arith.constant 0 : i32
    %c0_i32_1 = arith.constant 0 : i32
    return %c0_i32, %c0_i32_0 : i32, i32
  }
  func.func @transform_3(%arg0: i32) -> (i32, i32) {
    %c0_i32 = arith.constant 0 : i32
    %c0_i32_0 = arith.constant 0 : i32
    return %arg0, %c0_i32 : i32, i32
  }
}

</mosaic_0001>

<bundles_post_ra>
// kernel: tpu_custom_call.1
= control target key start
LH: loop header
LB: loop body
LE: loop exit
PB: predicated region body
PF: predicated region fallthrough
CT: control target
= control target key end

     0   :  { %8 = vsyncpa [#allocation3], 0  ;;  %v39_v28 = vlaneseq  ;;  %v936_v33 = vmov 1983009808   ;;  %v937_v43 = vmov 0.0   ;;  %vm938_vm0 = vmmov 0   ;;  %s1148_s0 = inlined_call_operand.vmem [shape: f32[2,784], index: 0, kind: input, shape index: {}]   ;;  %s1149_s1 = inlined_call_operand.vmem [shape: bf16[784,10], index: 1, kind: input, shape index: {}]   ;;  %s1150_s2 = inlined_call_operand.vmem [shape: f32[1,10], index: 2, kind: input, shape index: {}]   ;;  %s1151_s3 = inlined_call_operand.hbm [shape: f32[2,10], index: 3, kind: output, shape index: {}]  }
   0x1   :  { %v843_v0 = vld [vmem:[%s1149_s1 + $0x40] sm:$0xff]   ;;  %v847_v4 = vld [vmem:[%s1149_s1 + $0x48] sm:$0xff]   ;;  %v851_v8 = vld [vmem:[%s1149_s1 + $0x50] sm:$0xff]   ;;  %v37_v34 = vunpack.c.l.s4 %v936_v33  ;;  %vm516_vm1 = vcmask 130048   ;;  %vm688_vm2 = vcmask 80896  }
   0x2   :  { %v844_v1 = vld [vmem:[%s1149_s1] sm:$0xff]   ;;  %763 = vmatprep.subr.bf16.mxu0 %v843_v0  ;;  %v848_v5 = vld [vmem:[%s1149_s1 + $0x8] sm:$0xff]   ;;  %v852_v9 = vld [vmem:[%s1149_s1 + $0x10] sm:$0xff]   ;;  %v40_v35 = vshrl.u32 %v39_v28, 7 }
   0x3   :  { %v845_v2 = vld [vmem:[%s1149_s1 + $0xc0] sm:$0xff]   ;;  %764 = vmatpush3.bf16.msra.mxu0 %v844_v1  ;;  %v849_v6 = vld [vmem:[%s1149_s1 + $0xc8] sm:$0xff]   ;;  %v853_v10 = vld [vmem:[%s1149_s1 + $0xd0] sm:$0xff]   ;;  %v38_v37 = vunpack.c.0.s8 %v37_v34 }
   0x4   :  { %v846_v3 = vld [vmem:[%s1149_s1 + $0x80] sm:$0xff]   ;;  %785 = vmatprep.subr.bf16.mxu1 %v845_v2  ;;  %765 = vmatprep.subr.bf16.mxu0 %v847_v4  ;;  %v850_v7 = vld [vmem:[%s1149_s1 + $0x88] sm:$0xff]   ;;  %v854_v11 = vld [vmem:[%s1149_s1 + $0x90] sm:$0xff]  }
   0x5   :  { %786 = vmatpush3.bf16.msra.mxu1 %v846_v3  ;;  %v855_v12 = vld [vmem:[%s1149_s1 + $0x58] sm:$0xff]   ;;  %v859_v16 = vld [vmem:[%s1149_s1 + $0x60] sm:$0xff]   ;;  %v863_v20 = vld [vmem:[%s1149_s1 + $0x68] sm:$0xff]   ;;  %v41_v42 = vsub.s32 %v38_v37, %v40_v35 }
   0x6   :  { %787 = vmatprep.subr.bf16.mxu1 %v849_v6  ;;  %v856_v13 = vld [vmem:[%s1149_s1 + $0x18] sm:$0xff]   ;;  %v860_v17 = vld [vmem:[%s1149_s1 + $0x20] sm:$0xff]   ;;  %v864_v21 = vld [vmem:[%s1149_s1 + $0x28] sm:$0xff]  }
   0x7   :  { %766 = vmatpush3.bf16.msra.mxu0 %v848_v5  ;;  %v857_v14 = vld [vmem:[%s1149_s1 + $0xd8] sm:$0xff]   ;;  %v861_v18 = vld [vmem:[%s1149_s1 + $0xe0] sm:$0xff]   ;;  %v865_v22 = vld [vmem:[%s1149_s1 + $0xe8] sm:$0xff]  }
   0x8   :  { %767 = vmatprep.subr.bf16.mxu0 %v851_v8  ;;  %v858_v15 = vld [vmem:[%s1149_s1 + $0x98] sm:$0xff]   ;;  %v862_v19 = vld [vmem:[%s1149_s1 + $0xa0] sm:$0xff]   ;;  %v866_v23 = vld [vmem:[%s1149_s1 + $0xa8] sm:$0xff]  }
   0x9   :  { %788 = vmatpush3.bf16.msra.mxu1 %v850_v7  ;;  %v867_v24 = vld [vmem:[%s1149_s1 + $0x70] sm:$0xff]   ;;  %v871_v29 = vld [vmem:[%s1149_s1 + $0x78] sm:$0xff]   ;;  %v879_v39 = vld [vmem:[%s1149_s1 + $0x140] sm:$0xff]  }
   0xa   :  { %789 = vmatprep.subr.bf16.mxu1 %v853_v10  ;;  %v868_v25 = vld [vmem:[%s1149_s1 + $0x30] sm:$0xff]   ;;  %v872_v30 = vld [vmem:[%s1149_s1 + $0x38] sm:$0xff]   ;;  %v882_v55 = vld [vmem:[%s1149_s1 + $0x100] sm:$0xff]  }
   0xb   :  { %768 = vmatpush3.bf16.msra.mxu0 %v852_v9  ;;  %v869_v26 = vld [vmem:[%s1149_s1 + $0xf0] sm:$0xff]   ;;  %v873_v31 = vld [vmem:[%s1149_s1 + $0xf8] sm:$0xff]   ;;  %v883_v57 = vld [vmem:[%s1149_s1 + $0x148] sm:$0xff]  }
   0xc   :  { %769 = vmatprep.subr.bf16.mxu0 %v855_v12  ;;  %v870_v27 = vld [vmem:[%s1149_s1 + $0xb0] sm:$0xff]   ;;  %v876_v36 = vld [vmem:[%s1148_s0 + $0x1c] ss:$14 sps:$4 sm:$0xff]   ;;  %v897_v62 = vld [vmem:[%s1149_s1 + $0x180] sm:$0xff]  }
   0xd   :  { %790 = vmatpush3.bf16.msra.mxu1 %v854_v11  ;;  %v874_v32 = vld [vmem:[%s1148_s0] ss:$14 sps:$4 sm:$0xff]   ;;  %v878_v38 = vld [vmem:[%s1149_s1 + $0xb8] sm:$0xff]   ;;  %v880_v40 = vld [vmem:[%s1148_s0 + $0x4] ss:$14 sps:$4 sm:$0xff]   ;;  %v56_v45 = vrot.slane %v876_v36, %v41_v42 }
   0xe   :  { %791 = vmatprep.subr.bf16.mxu1 %v857_v14  ;;  %v881_v41 = vld [vmem:[%s1148_s0 + $0x20] ss:$14 sps:$4 sm:$0xff]   ;;  %v42_v44 = vrot.slane %v874_v32, %v41_v42  ;;  %v49_v46 = vrot.slane %v880_v40, %v41_v42  ;;  %v887_v61 = vld [vmem:[%s1149_s1 + $0x158] sm:$0xff]   ;;  %v901_v1 = vld [vmem:[%s1148_s0 + $0x24] ss:$14 sps:$4 sm:$0xff]  }
   0xf   :  { %770 = vmatpush3.bf16.msra.mxu0 %v856_v13  ;;  %v63_v47 = vrot.slane %v881_v41, %v41_v42  ;;  %v884_v58 = vld [vmem:[%s1149_s1 + $0x108] sm:$0xff]   ;;  %v885_v59 = vld [vmem:[%s1149_s1 + $0x150] sm:$0xff]   ;;  %v888_v63 = vld [vmem:[%s1149_s1 + $0x118] sm:$0xff]   ;;  %v92_v6 = vrot.slane %v901_v1, %v41_v42 }
  0x10   :  { %771 = vmatprep.subr.bf16.mxu0 %v859_v16  ;;  %v65_v48 = vcombine.high %v42_v44, %v56_v45  ;;  %v64_v49 = vcombine.low %v42_v44, %v56_v45  ;;  %v886_v60 = vld [vmem:[%s1149_s1 + $0x110] sm:$0xff]   ;;  %v900_v2 = vld [vmem:[%s1148_s0 + $0xc] ss:$14 sps:$4 sm:$0x33]   ;;  %v889_v4 = vld [vmem:[%s1149_s1 + $0x160] sm:$0xff]  }
  0x11   :  { %792 = vmatpush3.bf16.msra.mxu1 %v858_v15  ;;  %v67_v50 = vcombine.high %v49_v46, %v63_v47  ;;  %v66_v51 = vcombine.low %v49_v46, %v63_v47  ;;  %v898_v0 = vld [vmem:[%s1148_s0 + $0x8] ss:$14 sps:$4 sm:$0xff]   ;;  %v85_v7 = vrot.slane %v900_v2, %v41_v42  ;;  %v890_v10 = vld [vmem:[%s1149_s1 + $0x120] sm:$0xff]  }
  0x12   :  { %793 = vmatprep.subr.bf16.mxu1 %v861_v18  ;;  %v111_v52 = vpack.c.bf16 %v65_v48, %v65_v48  ;;  %v110_v53 = vpack.c.bf16 %v64_v49, %v64_v49  ;;  %v903_v3 = vld [vmem:[%s1148_s0 + $0x28] ss:$14 sps:$4 sm:$0x33]   ;;  %v78_v5 = vrot.slane %v898_v0, %v41_v42  ;;  %v895_v18 = vld [vmem:[%s1149_s1 + $0x178] sm:$0xff]  }
  0x13   :  { %772 = vmatpush3.bf16.msra.mxu0 %v860_v17  ;;  %v113_v54 = vpack.c.bf16 %v67_v50, %v67_v50  ;;  %v112_v56 = vpack.c.bf16 %v66_v51, %v66_v51  ;;  %v99_v8 = vrot.slane %v903_v3, %v41_v42  ;;  %v891_v12 = vld [vmem:[%s1149_s1 + $0x168] sm:$0xff]   ;;  %v893_v16 = vld [vmem:[%s1149_s1 + $0x170] sm:$0xff]  }
  0x14   :  { %773 = vmatprep.subr.bf16.mxu0 %v863_v20  ;;  %552 = vmatprep.mubr.bf16.mxu0 %v111_v52  ;;  %v101_v9 = vcombine.high %v78_v5, %v92_v6  ;;  %v892_v15 = vld [vmem:[%s1149_s1 + $0x128] sm:$0xff]   ;;  %v894_v17 = vld [vmem:[%s1149_s1 + $0x130] sm:$0xff]   ;;  %v896_v20 = vld [vmem:[%s1149_s1 + $0x138] sm:$0xff]  }
  0x15   :  { %794 = vmatpush3.bf16.msra.mxu1 %v862_v19  ;;  %592 = vmatprep.mubr.bf16.mxu1 %v113_v54  ;;  %v102_v11 = vcombine.low %v85_v7, %v99_v8  ;;  %v100_v19 = vcombine.low %v78_v5, %v92_v6 }
  0x16   :  { %795 = vmatprep.subr.bf16.mxu1 %v865_v22  ;;  %v115_v13 = vpack.c.bf16 %v101_v9, %v101_v9 }
  0x17   :  { %774 = vmatpush3.bf16.msra.mxu0 %v864_v21  ;;  %v116_v14 = vpack.c.bf16 %v102_v11, %v102_v11  ;;  %v114_v21 = vpack.c.bf16 %v100_v19, %v100_v19 }
  0x18   :  { %775 = vmatprep.subr.bf16.mxu0 %v867_v24  ;;  %v711_v24 = vld [vmem:[%s1150_s2] ss:$0 sm:$0xff] }
  0x19   :  { %796 = vmatpush3.bf16.msra.mxu1 %v866_v23 }
  0x1a   :  { %797 = vmatprep.subr.bf16.mxu1 %v869_v26 }
  0x1b   :  { %776 = vmatpush3.bf16.msra.mxu0 %v868_v25 }
  0x1c   :  { %777 = vmatprep.subr.bf16.mxu0 %v871_v29 }
  0x1d   :  { %798 = vmatpush3.bf16.msra.mxu1 %v870_v27 }
  0x1e   :  { %799 = vmatprep.subr.bf16.mxu1 %v873_v31 }
  0x1f   :  { %778 = vmatpush3.bf16.msra.mxu0 %v872_v30 }
  0x20   :  { %807 = vmatprep.subr.bf16.mxu0 %v879_v39 }
  0x21   :  { %800 = vmatpush3.bf16.msra.mxu1 %v878_v38 }
  0x22   :  { %831 = vmatprep.subr.bf16.mxu1 %v937_v43  ;;  %553 = vmatmul.mubr.bf16.vlgmr.msra.gmra.mrb[0].mxu0 %v110_v53 }
  0x23   :  { %808 = vmatpush3.bf16.msra.mxu0 %v882_v55  ;;  %632 = vmatprep.mubr.bf16.mxu0 %v115_v13 }
  0x24   :  { %593 = vmatmul.mubr.bf16.vlgmr.msra.gmra.mrb[0].mxu1 %v112_v56  ;;  %809 = vmatprep.subr.bf16.mxu0 %v883_v57 }
  0x25   :  { %833 = vmatprep.mubr.msk.bf16.mxu1 %vm938_vm0, %v937_v43  ;;  %832 = vmatpush3.bf16.msra.mxu1 %v897_v62 }
  0x27   :  { %810 = vmatpush3.bf16.msra.mxu0 %v884_v58 }
  0x28   :  { %811 = vmatprep.subr.bf16.mxu0 %v885_v59 }
  0x2b   :  { %812 = vmatpush3.bf16.msra.mxu0 %v886_v60 }
  0x2c   :  { %813 = vmatprep.subr.bf16.mxu0 %v887_v61  ;;  %834 = vmatmul.mubr.msk.bf16.vlgmr.msra.gmra.mrb[4].mxu1 %vm516_vm1, %v116_v14 }
  0x2f   :  { %814 = vmatpush3.bf16.msra.mxu0 %v888_v63 }
  0x30   :  { %815 = vmatprep.subr.bf16.mxu0 %v889_v4 }
  0x33   :  { %816 = vmatpush3.bf16.msra.mxu0 %v890_v10 }
  0x34   :  { %817 = vmatprep.subr.bf16.mxu0 %v891_v12 }
  0x37   :  { %818 = vmatpush3.bf16.msra.mxu0 %v892_v15 }
  0x38   :  { %819 = vmatprep.subr.bf16.mxu0 %v893_v16 }
  0x3b   :  { %820 = vmatpush3.bf16.msra.mxu0 %v894_v17 }
  0x3c   :  { %821 = vmatprep.subr.bf16.mxu0 %v895_v18 }
  0x3f   :  { %822 = vmatpush3.bf16.msra.mxu0 %v896_v20 }
  0x42   :  { %633 = vmatmul.mubr.bf16.vlgmr.msra.gmra.mrb[4].mxu0 %v114_v21 }
  0xf5   :  { %v779_v22 = vpop.f32.mrb[0].mxu0 }
  0xf6   :  { %v780_v25 = vpop.f32.mrb[1].mxu0 }
  0xf7   :  { %v801_v23 = vpop.f32.mrb[0].mxu1  ;;  %v781_v27 = vadd.f32 %v780_v25, %v779_v22  ;;  %v782_v28 = vpop.f32.mrb[2].mxu0 }
  0xf8   :  { %v802_v26 = vpop.f32.mrb[1].mxu1  ;;  %v783_v31 = vpop.f32.mrb[3].mxu0 }
  0xf9   :  { %v803_v29 = vadd.f32 %v802_v26, %v801_v23  ;;  %v804_v30 = vpop.f32.mrb[2].mxu1  ;;  %v555_v33 = vadd.f32 %v781_v27, %v711_v24 }
  0xfa   :  { %v805_v32 = vpop.f32.mrb[3].mxu1 }
  0xfb   :  { %v595_v34 = vadd.f32 %v803_v29, %v555_v33 }
  0xff   :  { %v674_v35 = vpop.f32.mrb[4].mxu1 }
 0x100   :  { %v835_v36 = vpop.f32.mrb[5].mxu1 }
 0x101   :  { %v677_v37 = vpop.f32.mrb[6].mxu1 }
 0x102   :  { %v836_v38 = vpop.f32.mrb[7].mxu1 }
 0x115   :  { %v823_v39 = vpop.f32.mrb[4].mxu0 }
 0x116   :  { %v824_v40 = vpop.f32.mrb[5].mxu0 }
 0x117   :  { %v825_v41 = vadd.f32 %v824_v40, %v823_v39  ;;  %v826_v42 = vpop.f32.mrb[6].mxu0 }
 0x118   :  { %v827_v43 = vpop.f32.mrb[7].mxu0 }
 0x119   :  { %v635_v44 = vadd.f32 %v825_v41, %v595_v34 }
 0x11b   :  { %v675_v45 = vadd.f32 %v674_v35, %v635_v44 }
 0x11d   :  { %v762_v46 = vmul.f32 -1.442695, %v675_v45 }
 0x11f   :  { %904 = vpow2.f32 %v762_v46 }
 0x129   :  { %v905_v47 = vpop.eup %904 }
 0x12a   :  { %v683_v48 = vadd.f32 1.0, %v905_v47 }
 0x12c   :  { %906 = vrcp.f32 %v683_v48 }
 0x136   :  { %v907_v49 = vpop.eup %906 }
 0x137   :  { %v686_v50 = vmul.f32 1.442695, %v907_v49 }
 0x139   :  { %908 = vpow2.f32 %v686_v50 }
 0x143   :  { %v909_v51 = vpop.eup %908 }
 0x144   :  { %v689_v52 = vsel %vm688_vm2, %v909_v51, 0.0 }
 0x145   :  { %690 = vadd.xlane.f32.xlu0 %v689_v52 }
 0x1d2   :  { %v691_v53 = vpop.xlane.xlu0 %690 }
 0x1d3   :  { %910 = vrcp.f32 %v691_v53 }
 0x1dd   :  { %v911_v54 = vpop.eup %910 }
 0x1de   :  { %v693_v55 = vmul.f32 %v911_v54, %v909_v51 }
 0x1e0   :  { %694 = vst.msk [vmem:[#allocation2] sm:$0xff] %vm688_vm2, %v693_v55 }
 0x1e1   :  { %699 = vsyncadd [#allocation3], 96  ;;  %s939_s1 = smov [#allocation2]  }
 0x1e2   :  { %s700_s2 = sshll.u32 %s939_s1, 4  ;;  %s701_s2 = int_to_ptr.vmem [resolvable:$true] %s700_s2 }
 0x1e3   :  { %s912_s19 = scalar_lea.vmem %s701_s2, 32  ;;  %s916_s20 = scalar_lea.vmem %s701_s2, 128 }
 0x1e4   :  { %p913_p0 = scmp.ne.s32.totalorder %s701_s2, %s912_s19  ;;  %p917_p1 = scmp.lt.s32.totalorder %s701_s2, %s701_s2 }
 0x1e5   :  { %p918_p2 = scmp.lt.s32.totalorder %s916_s20, %s912_s19 }
 0x1e7   :  { %p919_p3 = por %p918_p2, %p917_p1 }
 0x1e9   :  { %p920_p4 = pnand %p919_p3, %p913_p0 }
 0x1eb   :  { %923 = shalt.err (!%p920_p4)
}
 0x1ec   :  { %s924_s23 = scalar_lea.hbm %s1151_s3, 32 }
 0x1ed   :  { %p925_p5 = scmp.ne.s32.totalorder %s1151_s3, %s924_s23  ;;  %p928_p6 = scmp.lt.u32.totalorder %s924_s23, %s1151_s3 }
 0x1ef   :  { %p930_p7 = pnand %p928_p6, %p925_p5 }
 0x1f1   :  { %933 = shalt.err (!%p930_p7)
}
 0x1f2   :  { %s940_s28 = smov 32   ;;  %s941_s29 = smov 2  }
 0x1f3   :  { %706 = dma.vmem_to_hbm [thread:$0]  %s701_s2, 32, %s1151_s3, [#allocation3], %s940_s28, %s940_s28, %s941_s29  }
 0x1f4   :  { %934 = dma.done.wait [#allocation3], 128  }
 0x1f5   :  { %935 = vsyncadd [#allocation3], 4294967168 }
 0x1f6   :  { %710 = vsyncpa [#allocation3], 1 }

</bundles_post_ra>
